<compile_context>
chip_gen: v6e
topology: v6e:2x2x1
jax: 0.10.0
libtpu: 0.0.40
codegen_flags: <defaults>
</compile_context>

<pallas_src>
import math
from functools import partial

import jax
import jax.numpy as jnp
from jax.experimental import pallas as pl
from jax.experimental.pallas import tpu as pltpu

_LOG2E = math.log2(math.e)


# --------------------------------------------------------------------------
# Kernel A: fused QKV projection, head-major output (B, H, N, Dh) x 3.
# Grid: (B, row_tiles, H) -- head axis innermost so the x block is invariant
# over it (no redundant HBM re-read of x).  Per step: one wide matmul
# (tr, C) @ (C, 3*Dh), then static lane slices into q (pre-scaled) / k / v.
# --------------------------------------------------------------------------
def _qkv_fused_kernel(x_ref, w_ref, q_ref, k_ref, v_ref, *, dh, q_scale):
    x = x_ref[...].astype(w_ref.dtype)                     # bf16 MXU operand
    qkv = jnp.dot(x, w_ref[...], preferred_element_type=jnp.float32)
    # scale (and log2(e) for the exp2 softmax) folded into Q once: N*Dh work.
    q_ref[...] = (qkv[:, 0 * dh:1 * dh] * q_scale).astype(q_ref.dtype)
    k_ref[...] = qkv[:, 1 * dh:2 * dh].astype(k_ref.dtype)
    v_ref[...] = qkv[:, 2 * dh:3 * dh].astype(v_ref.dtype)


# --------------------------------------------------------------------------
# Kernel B: flash-style attention (online softmax over kv tiles, base-2
# exponent) fused with a full-depth output projection in the epilogue.
# Grid: (B, q_tiles, kv_tiles) -- kv axis is "arbitrary" (reduction).
# --------------------------------------------------------------------------
def _flash_mha_proj_kernel(q_ref, k_ref, v_ref, wp_ref, bp_ref, o_ref,
                           m_scr, l_scr, acc_scr, *, p_dtype):
    ki = pl.program_id(2)

    @pl.when(ki == 0)
    def _init():
        m_scr[...] = jnp.full(m_scr.shape, -jnp.inf, dtype=m_scr.dtype)
        l_scr[...] = jnp.zeros(l_scr.shape, dtype=l_scr.dtype)
        acc_scr[...] = jnp.zeros(acc_scr.shape, dtype=acc_scr.dtype)

    # Head-batched scores for this kv tile: (H, tq, tk).  Q carries
    # head_scale * log2(e), so exp2 below computes the exact softmax.
    s = jnp.einsum("hqd,hkd->hqk", q_ref[...], k_ref[...],
                   preferred_element_type=jnp.float32)

    m_prev = m_scr[...]
    m_new = jnp.maximum(m_prev, jnp.max(s, axis=-1, keepdims=True))
    alpha = jnp.exp2(m_prev - m_new)                          # (H, tq, 1) f32
    # exponent in bf16 (EUP relief on v6e/v7x); l accumulated in f32.
    p = jnp.exp2((s - m_new).astype(p_dtype))
    l_scr[...] = alpha * l_scr[...] + jnp.sum(
        p, axis=-1, keepdims=True, dtype=jnp.float32)
    acc_scr[...] = alpha * acc_scr[...] + jnp.einsum(
        "hqk,hkd->hqd", p.astype(v_ref.dtype), v_ref[...],
        preferred_element_type=jnp.float32)
    m_scr[...] = m_new

    @pl.when(ki == pl.num_programs(2) - 1)
    def _finalize():
        num_heads = acc_scr.shape[0]
        inv_l = pl.reciprocal(l_scr[...], approx=True)        # EUP, not VPU div
        ctx = acc_scr[...] * inv_l                            # (H, tq, Dh) f32
        # One relayout per q tile: (H, tq, Dh) -> lane-dense (tq, C), then a
        # single full-depth projection (tq, C) @ (C, C).
        ctx_flat = jnp.concatenate([ctx[h] for h in range(num_heads)], axis=-1)
        y = jnp.dot(ctx_flat.astype(wp_ref.dtype), wp_ref[...],
                    preferred_element_type=jnp.float32)
        y = y + bp_ref[...].astype(jnp.float32)
        o_ref[...] = y.astype(o_ref.dtype)


def _tile(n, preferred):
    """Largest divisor of n that is <= preferred and sublane-legal
    (a multiple of 8, or the full extent n itself)."""
    for t in range(min(preferred, n), 0, -1):
        if n % t == 0 and (t % 8 == 0 or t == n):
            return t
    return n


def attention_forward(x, w_qkv, w_proj, b_proj, *, num_heads,
                      block_q=256, block_kv=256, block_r=256,
                      compute_dtype=jnp.bfloat16,
                      softmax_dtype=jnp.bfloat16,
                      vmem_limit_bytes=48 * 1024 * 1024):
    """x: (B, N, C); w_qkv: (C, 3C); w_proj: (C, C); b_proj: (1, C).

    Tuning: v6e -> block_q up to 512; v7x -> block_kv=128 (64 MiB VMEM);
    v5e -> blocks of 128 and softmax_dtype=jnp.float32 (no bf16 EUP).
    """
    B, N, C = x.shape
    H = num_heads
    assert C % H == 0, "dim_emb must be divisible by num_heads"
    Dh = C // H
    q_scale = (float(Dh) ** -0.5) * _LOG2E      # log2(e) folded -> exp2 softmax
    out_dtype = x.dtype

    # One-time weight prep (outside the kernels): fused per-head QKV weight
    # (H, C, 3*Dh) with column order [q | k | v] per head, cast to bf16.
    wq = w_qkv[:, 0 * C:1 * C].reshape(C, H, Dh).transpose(1, 0, 2)
    wk = w_qkv[:, 1 * C:2 * C].reshape(C, H, Dh).transpose(1, 0, 2)
    wv = w_qkv[:, 2 * C:3 * C].reshape(C, H, Dh).transpose(1, 0, 2)
    w_fused = jnp.concatenate([wq, wk, wv], axis=-1).astype(compute_dtype)
    wp = w_proj.astype(compute_dtype)

    tr = _tile(N, block_r)
    tq = _tile(N, block_q)
    tk = _tile(N, block_kv)

    # ---- Kernel A: fused QKV projection -> (B, H, N, Dh) x 3 -------------
    q, k, v = pl.pallas_call(
        partial(_qkv_fused_kernel, dh=Dh, q_scale=q_scale),
        out_shape=(
            jax.ShapeDtypeStruct((B, H, N, Dh), compute_dtype),
            jax.ShapeDtypeStruct((B, H, N, Dh), compute_dtype),
            jax.ShapeDtypeStruct((B, H, N, Dh), compute_dtype),
        ),
        grid=(B, N // tr, H),
        in_specs=[
            # x block is invariant over the innermost head axis -> no re-DMA.
            pl.BlockSpec((None, tr, C), lambda b, r, h: (b, r, 0)),
            pl.BlockSpec((None, C, 3 * Dh), lambda b, r, h: (h, 0, 0)),
        ],
        out_specs=[
            pl.BlockSpec((None, None, tr, Dh), lambda b, r, h: (b, h, r, 0)),
            pl.BlockSpec((None, None, tr, Dh), lambda b, r, h: (b, h, r, 0)),
            pl.BlockSpec((None, None, tr, Dh), lambda b, r, h: (b, h, r, 0)),
        ],
        compiler_params=pltpu.CompilerParams(
            dimension_semantics=("parallel", "parallel", "arbitrary"),
            vmem_limit_bytes=vmem_limit_bytes),
    )(x, w_fused)

    # ---- Kernel B: flash attention + fused full-depth output projection ---
    out = pl.pallas_call(
        partial(_flash_mha_proj_kernel, p_dtype=softmax_dtype),
        out_shape=jax.ShapeDtypeStruct((B, N, C), out_dtype),
        grid=(B, N // tq, N // tk),
        in_specs=[
            pl.BlockSpec((None, H, tq, Dh), lambda b, qi, ki: (b, 0, qi, 0)),
            pl.BlockSpec((None, H, tk, Dh), lambda b, qi, ki: (b, 0, ki, 0)),
            pl.BlockSpec((None, H, tk, Dh), lambda b, qi, ki: (b, 0, ki, 0)),
            pl.BlockSpec((C, C), lambda b, qi, ki: (0, 0)),   # constant
            pl.BlockSpec((1, C), lambda b, qi, ki: (0, 0)),   # constant
        ],
        out_specs=pl.BlockSpec((None, tq, C), lambda b, qi, ki: (b, qi, 0)),
        scratch_shapes=[
            pltpu.VMEM((H, tq, 1), jnp.float32),    # running max m (base-2)
            pltpu.VMEM((H, tq, 1), jnp.float32),    # running sum l
            pltpu.VMEM((H, tq, Dh), jnp.float32),   # running accumulator
        ],
        compiler_params=pltpu.CompilerParams(
            dimension_semantics=("parallel", "parallel", "arbitrary"),
            vmem_limit_bytes=vmem_limit_bytes),
    )(q, k, v, wp, b_proj)
    return out


# --------------------------------------------------------------------------
# Pure-JAX reference (mirrors the PyTorch module, mask=None, dropout=0).
# --------------------------------------------------------------------------
def _reference(x, w_qkv, w_proj, b_proj, num_heads):
    B, N, C = x.shape
    Dh = C // num_heads
    scale = Dh ** -0.5
    qkv = jnp.einsum("bnc,cd->bnd", x, w_qkv)                  # (B, N, 3C)
    qkv = qkv.reshape(B, N, 3, num_heads, Dh).transpose(2, 0, 3, 1, 4)
    q, k, v = qkv[0], qkv[1], qkv[2]                           # (B, H, N, Dh)
    attn = jnp.einsum("bhnd,bhmd->bhnm", q, k) * scale
    attn = jax.nn.softmax(attn, axis=-1)
    out = jnp.einsum("bhnm,bhmd->bhnd", attn, v)
    out = out.transpose(0, 2, 1, 3).reshape(B, N, C)
    return jnp.einsum("bnc,cd->bnd", out, w_proj) + b_proj[0]


if __name__ == "__main__":
    def _run_case(B, N, C, num_heads, block):
        key = jax.random.PRNGKey(0)
        kx, kqkv, kproj, kb = jax.random.split(key, 4)
        x = jax.random.normal(kx, (B, N, C), dtype=jnp.float32)
        w_qkv = jax.random.normal(kqkv, (C, 3 * C), dtype=jnp.float32) * 0.05
        w_proj = jax.random.normal(kproj, (C, C), dtype=jnp.float32) * 0.05
        b_proj = jax.random.normal(kb, (1, C), dtype=jnp.float32) * 0.05

        out = attention_forward(x, w_qkv, w_proj, b_proj, num_heads=num_heads,
                                block_q=block, block_kv=block, block_r=block)
        out = jax.block_until_ready(out)

        ref = _reference(x, w_qkv, w_proj, b_proj, num_heads)
        assert out.shape == (B, N, C)
        # bf16 intermediates + approx reciprocal -> relaxed (but meaningful)
        # tolerance vs the full-f32 reference.
        assert jnp.allclose(out, ref, atol=5e-3, rtol=3e-2), \
            f"mismatch vs reference for shape {(B, N, C)}"

    # Small shape consistent with the module: B=2, N=8 tokens, C=32, 8 heads.
    _run_case(B=2, N=8, C=32, num_heads=8, block=128)
    # Larger shape exercising the tiled flash path (multiple kv tiles).
    _run_case(B=2, N=256, C=64, num_heads=4, block=128)

    print("KERNEL_OK")
</pallas_src>

<mosaic_0001>
module attributes {stable_mosaic.version = 11 : i64} {
  func.func @_qkv_fused_kernel(%arg0: i32, %arg1: i32, %arg2: i32, %arg3: memref<1x8x32xf32, #tpu.memory_space<vmem>>, %arg4: memref<1x32x12xbf16, #tpu.memory_space<vmem>>, %arg5: memref<1x1x8x4xbf16, #tpu.memory_space<vmem>>, %arg6: memref<1x1x8x4xbf16, #tpu.memory_space<vmem>>, %arg7: memref<1x1x8x4xbf16, #tpu.memory_space<vmem>>) attributes {dimension_semantics = [#tpu.dimension_semantics<parallel>, #tpu.dimension_semantics<parallel>, #tpu.dimension_semantics<arbitrary>], iteration_bounds = array<i64: 2, 1, 8>, scalar_prefetch = 0 : i64, scratch_operands = 0 : i64, tpu.core_type = #tpu.core_type<tc>, window_params = [{transform_indices = @transform_0, window_bounds = array<i64: 1, 8, 32>}, {transform_indices = @transform_1, window_bounds = array<i64: 1, 32, 12>}, {transform_indices = @transform_2, window_bounds = array<i64: 1, 1, 8, 4>}, {transform_indices = @transform_3, window_bounds = array<i64: 1, 1, 8, 4>}, {transform_indices = @transform_4, window_bounds = array<i64: 1, 1, 8, 4>}]} {
    %c0 = arith.constant 0 : index
    %c0_0 = arith.constant 0 : index
    %c0_1 = arith.constant 0 : index
    %0 = vector.load %arg3[%c0, %c0_0, %c0_1] : memref<1x8x32xf32, #tpu.memory_space<vmem>>, vector<1x8x32xf32>
    %1 = vector.shape_cast %0 : vector<1x8x32xf32> to vector<8x32xf32>
    %2 = arith.truncf %1 : vector<8x32xf32> to vector<8x32xbf16>
    %c0_2 = arith.constant 0 : index
    %c0_3 = arith.constant 0 : index
    %c0_4 = arith.constant 0 : index
    %3 = vector.load %arg4[%c0_2, %c0_3, %c0_4] : memref<1x32x12xbf16, #tpu.memory_space<vmem>>, vector<1x32x12xbf16>
    %4 = vector.shape_cast %3 : vector<1x32x12xbf16> to vector<32x12xbf16>
    %cst = arith.constant dense<0.000000e+00> : vector<8x12xf32>
    %5 = tpu.matmul %2, %4, %cst {dimension_numbers = #tpu.dot_dimension_numbers<[1], [0], [0], [1], [0, 0, 1, 1], [], []>} : vector<8x32xbf16>, vector<32x12xbf16>, vector<8x12xf32> -> vector<8x12xf32>
    %6 = vector.extract_strided_slice %5 {offsets = [0, 0], sizes = [8, 4], strides = [1, 1]} : vector<8x12xf32> to vector<8x4xf32>
    %cst_5 = arith.constant 0.72134751 : f32
    %7 = vector.broadcast %cst_5 : f32 to vector<8x4xf32>
    %8 = arith.mulf %6, %7 : vector<8x4xf32>
    %9 = arith.truncf %8 : vector<8x4xf32> to vector<8x4xbf16>
    %c0_6 = arith.constant 0 : index
    %c0_7 = arith.constant 0 : index
    %c0_8 = arith.constant 0 : index
    %c0_9 = arith.constant 0 : index
    %10 = vector.load %arg5[%c0_6, %c0_7, %c0_8, %c0_9] : memref<1x1x8x4xbf16, #tpu.memory_space<vmem>>, vector<1x1x8x4xbf16>
    %11 = vector.shape_cast %10 : vector<1x1x8x4xbf16> to vector<8x4xbf16>
    %12 = vector.shape_cast %9 : vector<8x4xbf16> to vector<1x1x8x4xbf16>
    tpu.vector_store %arg5[%c0_6, %c0_7, %c0_8, %c0_9], %12 {strides = array<i32>} : memref<1x1x8x4xbf16, #tpu.memory_space<vmem>>, vector<1x1x8x4xbf16>,
    %13 = vector.extract_strided_slice %5 {offsets = [0, 4], sizes = [8, 4], strides = [1, 1]} : vector<8x12xf32> to vector<8x4xf32>
    %14 = arith.truncf %13 : vector<8x4xf32> to vector<8x4xbf16>
    %c0_10 = arith.constant 0 : index
    %c0_11 = arith.constant 0 : index
    %c0_12 = arith.constant 0 : index
    %c0_13 = arith.constant 0 : index
    %15 = vector.load %arg6[%c0_10, %c0_11, %c0_12, %c0_13] : memref<1x1x8x4xbf16, #tpu.memory_space<vmem>>, vector<1x1x8x4xbf16>
    %16 = vector.shape_cast %15 : vector<1x1x8x4xbf16> to vector<8x4xbf16>
    %17 = vector.shape_cast %14 : vector<8x4xbf16> to vector<1x1x8x4xbf16>
    tpu.vector_store %arg6[%c0_10, %c0_11, %c0_12, %c0_13], %17 {strides = array<i32>} : memref<1x1x8x4xbf16, #tpu.memory_space<vmem>>, vector<1x1x8x4xbf16>,
    %18 = vector.extract_strided_slice %5 {offsets = [0, 8], sizes = [8, 4], strides = [1, 1]} : vector<8x12xf32> to vector<8x4xf32>
    %19 = arith.truncf %18 : vector<8x4xf32> to vector<8x4xbf16>
    %c0_14 = arith.constant 0 : index
    %c0_15 = arith.constant 0 : index
    %c0_16 = arith.constant 0 : index
    %c0_17 = arith.constant 0 : index
    %20 = vector.load %arg7[%c0_14, %c0_15, %c0_16, %c0_17] : memref<1x1x8x4xbf16, #tpu.memory_space<vmem>>, vector<1x1x8x4xbf16>
    %21 = vector.shape_cast %20 : vector<1x1x8x4xbf16> to vector<8x4xbf16>
    %22 = vector.shape_cast %19 : vector<8x4xbf16> to vector<1x1x8x4xbf16>
    tpu.vector_store %arg7[%c0_14, %c0_15, %c0_16, %c0_17], %22 {strides = array<i32>} : memref<1x1x8x4xbf16, #tpu.memory_space<vmem>>, vector<1x1x8x4xbf16>,
    return
  }
  func.func @transform_0(%arg0: i32, %arg1: i32, %arg2: i32) -> (i32, i32, i32) {
    %c0_i32 = arith.constant 0 : i32
    %c0_i32_0 = arith.constant 0 : i32
    return %arg0, %arg1, %c0_i32 : i32, i32, i32
  }
  func.func @transform_1(%arg0: i32, %arg1: i32, %arg2: i32) -> (i32, i32, i32) {
    %c0_i32 = arith.constant 0 : i32
    %c0_i32_0 = arith.constant 0 : i32
    %c0_i32_1 = arith.constant 0 : i32
    return %arg2, %c0_i32, %c0_i32_0 : i32, i32, i32
  }
  func.func @transform_2(%arg0: i32, %arg1: i32, %arg2: i32) -> (i32, i32, i32, i32) {
    %c0_i32 = arith.constant 0 : i32
    %c0_i32_0 = arith.constant 0 : i32
    return %arg0, %arg2, %arg1, %c0_i32 : i32, i32, i32, i32
  }
  func.func @transform_3(%arg0: i32, %arg1: i32, %arg2: i32) -> (i32, i32, i32, i32) {
    %c0_i32 = arith.constant 0 : i32
    %c0_i32_0 = arith.constant 0 : i32
    return %arg0, %arg2, %arg1, %c0_i32 : i32, i32, i32, i32
  }
  func.func @transform_4(%arg0: i32, %arg1: i32, %arg2: i32) -> (i32, i32, i32, i32) {
    %c0_i32 = arith.constant 0 : i32
    %c0_i32_0 = arith.constant 0 : i32
    return %arg0, %arg2, %arg1, %c0_i32 : i32, i32, i32, i32
  }
}

</mosaic_0001>

<bundles_post_ra>
// kernel: tpu_custom_call.1
= control target key start
LH: loop header
LB: loop body
LE: loop exit
PB: predicated region body
PF: predicated region fallthrough
CT: control target
= control target key end

     0   :  { %s767_s15 = smov 0   ;;  %s769_s16 = smov 0   ;;  %s827_s0 = inlined_call_operand.vmem [shape: f32[2,8,32], index: 0, kind: input, shape index: {}]   ;;  %s828_s1 = inlined_call_operand.vmem [shape: bf16[8,32,12], index: 1, kind: input, shape index: {}]   ;;  %s829_s2 = inlined_call_operand.vmem [shape: bf16[2,8,8,4], index: 2, kind: output, shape index: {0}]   ;;  %s830_s3 = inlined_call_operand.vmem [shape: bf16[2,8,8,4], index: 3, kind: output, shape index: {1}]   ;;  %s831_s4 = inlined_call_operand.vmem [shape: bf16[2,8,8,4], index: 4, kind: output, shape index: {2}]  }
   0x1   :  { %s771_s17 = smov 0   ;;  %s773_s18 = smov 0  }
   0x2   :  { %s775_s19 = smov 0  }
   0x3 LB: > { %s27_s20 = sadd.s32 1, %s728_s17  ;;  %s34_s21 = sadd.s32 1, %s732_s18  ;;  %s736_s19 = sphi %s775_s19, %s15_s19   ;;  %s732_s18 = sphi %s773_s18, %s835_s18   ;;  %s728_s17 = sphi %s771_s17, %s834_s17   ;;  %s724_s16 = sphi %s769_s16, %s833_s16   ;;  %s720_s15 = sphi %s767_s15, %s832_s15  }
   0x4   : > { %p28_p0 = scmp.ge.s32.totalorder %s27_s20, 8  ;;  %p623_p1 = scmp.ge.s32.totalorder %s736_s19, 1 }
   0x5   : > { %p212_p2 = scmp.lt.s32.totalorder %s736_s19, 17 }
   0x6   : > { %s837_s20 = smov (%p28_p0, %s27_s20), 0  ;;  %s839_s21 = smov (!%p28_p0, %s34_s21), %s732_s18 }
   0x7   : > { %p213_p3 = pnand %p623_p1, %p212_p2  ;;  %p36_p4 = scmp.ge.s32.totalorder %s839_s21, 2 }
   0x8   : > { %p280_p5 = scmp.lt.s32.totalorder (!%p213_p3), %s720_s15, 7  ;;  %p273_p6 = scmp.lt.s32.totalorder (!%p213_p3), %s724_s16, 1 }
   0x9   : > { %s841_s21 = smov (%p36_p4, %s839_s21), 0  ;;  %216 = sbr.rel (%p213_p3) target bundleno = 340 (0x154), region = 28 }
   0xa   : > { %s740_s9 = smov (!%p213_p3), 124   ;;  %s741_s10 = smov (!%p213_p3), 120  }
   0xe   : > { %v738_v0 = vmov 0.0   ;;  %vm739_vm0 = vmmov 0   ;;  %s843_s15 = smov (!%p280_p5, %s720_s15), 7  ;;  %s845_s16 = smov (!%p273_p6, %s724_s16), 1  ;;  %vm337_vm1 = vcmask 261120   ;;  %vm383_vm2 = vcmask 27648  }
   0xf   : > { %644 = vmatprep.subr.bf16.mxu0 %v738_v0  ;;  %648 = vmatprep.mubr.msk.bf16.mxu0 %vm739_vm0, %v738_v0  ;;  %s639_s22 = sshll.u32 %s843_s15, 4  ;;  %s624_s26 = sshll.u32 %s845_s16, 3 }
  0x10   : > { %s284_s25 = scalar_lea.vmem %s828_s1, %s639_s22  ;;  %s279_s29 = scalar_lea.vmem %s827_s0, %s624_s26 }
  0x11   : > { %v696_v1 = vld [vmem:[%s284_s25 + $0x8] sm:$0xff]   ;;  %v697_v2 = vld [vmem:[%s284_s25] sm:$0xff]   ;;  %s293_s30 = sadd.s32 %s624_s26, %s843_s15 }
  0x12   : > { %645 = vmatpush3.bf16.msra.mxu0 %v696_v1  ;;  %v319_v3 = vld [vmem:[%s279_s29] sm:$0xff]  ;;  %s628_s5 = sshll.u32 %s293_s30, 2 }
  0x13   : > { %646 = vmatprep.subr.bf16.mxu0 %v738_v0  ;;  %v320_v4 = vpack.c.bf16 %v319_v3, %v319_v3  ;;  %s295_s8 = scalar_lea.vmem %s829_s2, %s628_s5  ;;  %s306_s13 = scalar_lea.vmem %s830_s3, %s628_s5 }
  0x14   : > { %s317_s16 = scalar_lea.vmem %s831_s4, %s628_s5 }
  0x16   : > { %647 = vmatpush3.bf16.msra.mxu0 %v697_v2 }
  0x19   : > { %649 = vmatmul.mubr.msk.bf16.vlgmr.msra.gmra.mxu0 %vm337_vm1, %v320_v4 }
  0xd9   : > { %v375_v5 = vpop.f32.mrf.mxu0 }
  0xda   : > { %v381_v6 = vmul.f32 0.7213475, %v375_v5  ;;  %v640_v7 = vpack.c.bf16 %v375_v5, %v375_v5 }
  0xdb   : > { %v650_v8 = vpop.f32.mrf.mxu0 }
  0xdc   : > { %v382_v9 = vpack.c.bf16 %v381_v6, %v381_v6  ;;  %389 = vrot.lane.b32.xlu0 %v640_v7, %s740_s9 }
  0xdd   : > { %v378_v10 = vpop.f32.mrf.mxu0 }
  0xde   : > { %384 = vst.msk [vmem:[%s295_s8] sm:$0xf] %vm383_vm2, %v382_v9 }
  0xdf   : > { %v651_v11 = vpop.f32.mrf.mxu0 }
  0xe0   : > { %393 = vrot.lane.b32.xlu0 %v640_v7, %s741_s10 }
 0x14e   : > { %v390_v12 = vpop.permute.xlu0 %389 }
 0x14f   : > { %392 = vst.msk [vmem:[%s306_s13] sm:$0xf] %vm383_vm2, %v390_v12 }
 0x152   : > { %v394_v13 = vpop.permute.xlu0 %393 }
 0x153   : > { %396 = vst.msk [vmem:[%s317_s16] sm:$0xf] %vm383_vm2, %v394_v13 }
 0x154 PF: > { %s15_s19 = sadd.s32 1, %s736_s19   ;;  %s832_s15 = smov %s728_s17 }
 0x155   : > { %p12_p7 = scmp.ge.s32.totalorder %s15_s19, 18   ;;  %s833_s16 = smov %s732_s18 }
 0x156   : > { %s834_s17 = smov %s837_s20  ;;  %s835_s18 = smov %s841_s21 }
 0x157   :  { %14 = sbr.rel (!%p12_p7) target bundleno = 3 (0x3), region = 85 }

</bundles_post_ra>
